<compile_context>
chip_gen: v7x
topology: tpu7x:2x2x1
jax: 0.10.0
libtpu: 0.0.40
codegen_flags: <defaults>
</compile_context>

<pallas_src>
import jax
import jax.numpy as jnp
from jax.experimental import pallas as pl
from jax.experimental.pallas import tpu as pltpu


def _s2d_conv_kernel(t_ref, w_ref, o_ref):
    """One row-tile of the stride-2 3x3 conv.

    t_ref : (th+1, Wp, 4C)  bf16  space-to-depth planes tile (1-row/1-col halo)
    w_ref : (4, 4C, Cout)   bf16  weights for the 4 (dh, dw) taps
    o_ref : (th, Wo, Cout)  f32   output tile
    """
    th, Wo, Cout = o_ref.shape
    C4 = t_ref.shape[-1]

    acc = jnp.zeros((th * Wo, Cout), jnp.float32)
    for dh in range(2):                      # static unroll: 4 taps, static slices
        for dw in range(2):
            lhs = t_ref[dh:dh + th, dw:dw + Wo, :].reshape(th * Wo, C4)
            acc = acc + jnp.dot(lhs, w_ref[dh * 2 + dw],
                                preferred_element_type=jnp.float32)
    o_ref[...] = acc.reshape(th, Wo, Cout).astype(o_ref.dtype)


def _pick_row_tile(Ho, Wo, C4, Cout):
    """Output rows per grid step: aim for ~1024 matmul rows, bounded by a
    conservative VMEM budget (fits v5e 16MiB / v6e 32MiB / v7x 32MiB defaults)."""
    budget = 12 * 1024 * 1024

    def vmem_bytes(t):
        in_b = 2 * (t + 1) * (Wo + 1) * C4 * 2    # double-buffered bf16 input tile
        out_b = 2 * t * Wo * Cout * 4             # double-buffered f32 output tile
        w_b = 4 * C4 * Cout * 2                   # resident weights
        return in_b + out_b + w_b

    th = max(1, min(Ho, pl.cdiv(1024, max(Wo, 1))))
    while th > 1 and vmem_bytes(th) > budget:
        th -= 1
    return th


@jax.jit
def conv3x3_s2_p1_pallas(x_nchw, w_oihw):
    """3x3 conv, stride 2, padding 1, no bias — fused space-to-depth + Pallas matmuls."""
    B, C, H, W = x_nchw.shape
    Cout = w_oihw.shape[0]
    Ho = (H - 1) // 2 + 1
    Wo = (W - 1) // 2 + 1
    Hp, Wp = Ho + 1, Wo + 1
    C4 = 4 * C

    # ---- glue (fused by XLA; ~1x data movement, no 9x im2col round trip) ----
    # TODO(synk): if the surrounding model carried NHWC activations, the entry/exit
    #             transposes below could be dropped entirely.
    xh = jnp.transpose(x_nchw, (0, 2, 3, 1)).astype(jnp.bfloat16)          # (B,H,W,C)
    xp = jnp.pad(xh, ((0, 0), (1, 2 * Ho + 1 - H), (1, 2 * Wo + 1 - W), (0, 0)))
    # space-to-depth (pixel-unshuffle) of the zero-padded input:
    planes = xp.reshape(B, Hp, 2, Wp, 2, C)
    planes = planes.transpose(0, 1, 3, 2, 4, 5).reshape(B, Hp, Wp, C4)     # (B,Hp,Wp,4C)

    th = _pick_row_tile(Ho, Wo, C4, Cout)
    nTh = pl.cdiv(Ho, th)
    # Halo'd row tiles: output rows [t*th, t*th+th) need plane rows [t*th, t*th+th].
    planes = jnp.pad(planes, ((0, 0), (0, nTh * th + 1 - Hp), (0, 0), (0, 0)))
    tiles = jnp.stack([planes[:, t * th: t * th + th + 1] for t in range(nTh)], axis=1)
    NT = B * nTh
    tiles = tiles.reshape(NT, th + 1, Wp, C4)                              # bf16

    # Weights: (Cout, C, 3, 3) -> (4 taps, 4C, Cout); 7 of 16 (tap,parity) slots are 0.
    W2 = jnp.zeros((2, 2, C4, Cout), jnp.float32)
    for kh in range(3):
        for kw in range(3):
            dh, ph = divmod(kh, 2)
            dw, pw = divmod(kw, 2)
            c0 = (ph * 2 + pw) * C
            W2 = W2.at[dh, dw, c0:c0 + C, :].set(jnp.transpose(w_oihw[:, :, kh, kw]))
    W2 = W2.reshape(4, C4, Cout).astype(jnp.bfloat16)

    flops = 2 * 4 * NT * th * Wo * C4 * Cout
    bytes_accessed = tiles.size * 2 + W2.size * 2 + NT * th * Wo * Cout * 4

    out = pl.pallas_call(
        _s2d_conv_kernel,
        out_shape=jax.ShapeDtypeStruct((NT, th, Wo, Cout), jnp.float32),
        grid_spec=pltpu.PrefetchScalarGridSpec(
            num_scalar_prefetch=0,
            grid=(NT,),
            in_specs=[
                pl.BlockSpec((None, th + 1, Wp, C4), lambda i: (i, 0, 0, 0)),
                pl.BlockSpec((4, C4, Cout), lambda i: (0, 0, 0)),
            ],
            out_specs=pl.BlockSpec((None, th, Wo, Cout), lambda i: (i, 0, 0, 0)),
        ),
        compiler_params=pltpu.CompilerParams(
            dimension_semantics=("parallel",),
            vmem_limit_bytes=32 * 1024 * 1024,
        ),
        cost_estimate=pl.CostEstimate(
            flops=flops, bytes_accessed=bytes_accessed, transcendentals=0),
    )(tiles, W2)

    y = out.reshape(B, nTh * th, Wo, Cout)[:, :Ho]                         # drop row padding
    return jnp.transpose(y, (0, 3, 1, 2))                                  # back to NCHW


class Downsample:
    """JAX/Pallas port of the PyTorch Downsample module (deterministic init)."""

    def __init__(self, n_feat, key):
        k1, k2, k3 = jax.random.split(key, 3)
        # Parameters declared in __init__ (only `third` is used in forward):
        self.w = jnp.array([0.7], jnp.float32)
        self.first_w = jax.random.normal(
            k1, (n_feat // 2, n_feat, 1, 1), jnp.float32) / jnp.sqrt(n_feat * 1.0)
        self.second_w = jax.random.normal(
            k2, (n_feat // 2, n_feat, 3, 3), jnp.float32) / jnp.sqrt(n_feat * 9.0)
        self.third_w = jax.random.normal(
            k3, (n_feat * 2, n_feat, 3, 3), jnp.float32) / jnp.sqrt(n_feat * 9.0)

    def __call__(self, x):
        _weight = jax.nn.sigmoid(self.w)  # computed but unused, matching PyTorch forward
        return conv3x3_s2_p1_pallas(x, self.third_w)


if __name__ == "__main__":
    key = jax.random.PRNGKey(0)
    k_param, k_x = jax.random.split(key)

    n_feat = 4
    B, H, W = 2, 16, 16
    x = jax.random.normal(k_x, (B, n_feat, H, W), jnp.float32)

    mod = Downsample(n_feat, k_param)
    y = jax.block_until_ready(mod(x))

    # Correctness check against XLA's native conv (same semantics as nn.Conv2d).
    ref = jax.lax.conv_general_dilated(
        x, mod.third_w,
        window_strides=(2, 2),
        padding=((1, 1), (1, 1)),
        dimension_numbers=("NCHW", "OIHW", "NCHW"),
    )
    assert y.shape == (B, 2 * n_feat, H // 2, W // 2), y.shape
    err = float(jnp.max(jnp.abs(y - ref)))
    # bf16 MXU operands vs f32 reference -> loose tolerance
    assert err < 7.5e-2, err

    print("KERNEL_OK")
</pallas_src>

<mosaic_0001>
module attributes {stable_mosaic.version = 11 : i64} {
  func.func @_s2d_conv_kernel(%arg0: i32, %arg1: memref<1x9x9x16xbf16, #tpu.memory_space<vmem>>, %arg2: memref<4x16x8xbf16, #tpu.memory_space<vmem>>, %arg3: memref<1x8x8x8xf32, #tpu.memory_space<vmem>>) attributes {dimension_semantics = [#tpu.dimension_semantics<parallel>], iteration_bounds = array<i64: 2>, scalar_prefetch = 0 : i64, scratch_operands = 0 : i64, tpu.core_type = #tpu.core_type<tc>, window_params = [{transform_indices = @transform_0, window_bounds = array<i64: 1, 9, 9, 16>}, {pipeline_mode = #tpu.pipeline_mode<synchronous>, transform_indices = @transform_1, window_bounds = array<i64: 4, 16, 8>}, {transform_indices = @transform_2, window_bounds = array<i64: 1, 8, 8, 8>}]} {
    %cst = arith.constant 0.000000e+00 : f32
    %0 = vector.broadcast %cst : f32 to vector<64x8xf32>
    %c0 = arith.constant 0 : index
    %c0_0 = arith.constant 0 : index
    %c0_1 = arith.constant 0 : index
    %c0_2 = arith.constant 0 : index
    %1 = vector.load %arg1[%c0, %c0_0, %c0_1, %c0_2] : memref<1x9x9x16xbf16, #tpu.memory_space<vmem>>, vector<1x8x8x16xbf16>
    %2 = vector.shape_cast %1 : vector<1x8x8x16xbf16> to vector<8x8x16xbf16>
    %3 = vector.shape_cast %2 : vector<8x8x16xbf16> to vector<64x16xbf16>
    %c0_3 = arith.constant 0 : index
    %c0_4 = arith.constant 0 : index
    %c0_5 = arith.constant 0 : index
    %4 = vector.load %arg2[%c0_3, %c0_4, %c0_5] : memref<4x16x8xbf16, #tpu.memory_space<vmem>>, vector<1x16x8xbf16>
    %5 = vector.shape_cast %4 : vector<1x16x8xbf16> to vector<16x8xbf16>
    %cst_6 = arith.constant dense<0.000000e+00> : vector<64x8xf32>
    %6 = tpu.matmul %3, %5, %cst_6 {dimension_numbers = #tpu.dot_dimension_numbers<[1], [0], [0], [1], [0, 0, 1, 1], [], []>} : vector<64x16xbf16>, vector<16x8xbf16>, vector<64x8xf32> -> vector<64x8xf32>
    %7 = arith.addf %0, %6 : vector<64x8xf32>
    %c0_7 = arith.constant 0 : index
    %c0_8 = arith.constant 0 : index
    %c1 = arith.constant 1 : index
    %c0_9 = arith.constant 0 : index
    %8 = vector.load %arg1[%c0_7, %c0_8, %c1, %c0_9] : memref<1x9x9x16xbf16, #tpu.memory_space<vmem>>, vector<1x8x8x16xbf16>
    %9 = vector.shape_cast %8 : vector<1x8x8x16xbf16> to vector<8x8x16xbf16>
    %10 = vector.shape_cast %9 : vector<8x8x16xbf16> to vector<64x16xbf16>
    %c1_10 = arith.constant 1 : index
    %c0_11 = arith.constant 0 : index
    %c0_12 = arith.constant 0 : index
    %11 = vector.load %arg2[%c1_10, %c0_11, %c0_12] : memref<4x16x8xbf16, #tpu.memory_space<vmem>>, vector<1x16x8xbf16>
    %12 = vector.shape_cast %11 : vector<1x16x8xbf16> to vector<16x8xbf16>
    %cst_13 = arith.constant dense<0.000000e+00> : vector<64x8xf32>
    %13 = tpu.matmul %10, %12, %cst_13 {dimension_numbers = #tpu.dot_dimension_numbers<[1], [0], [0], [1], [0, 0, 1, 1], [], []>} : vector<64x16xbf16>, vector<16x8xbf16>, vector<64x8xf32> -> vector<64x8xf32>
    %14 = arith.addf %7, %13 : vector<64x8xf32>
    %c0_14 = arith.constant 0 : index
    %c1_15 = arith.constant 1 : index
    %c0_16 = arith.constant 0 : index
    %c0_17 = arith.constant 0 : index
    %15 = vector.load %arg1[%c0_14, %c1_15, %c0_16, %c0_17] : memref<1x9x9x16xbf16, #tpu.memory_space<vmem>>, vector<1x8x8x16xbf16>
    %16 = vector.shape_cast %15 : vector<1x8x8x16xbf16> to vector<8x8x16xbf16>
    %17 = vector.shape_cast %16 : vector<8x8x16xbf16> to vector<64x16xbf16>
    %c2 = arith.constant 2 : index
    %c0_18 = arith.constant 0 : index
    %c0_19 = arith.constant 0 : index
    %18 = vector.load %arg2[%c2, %c0_18, %c0_19] : memref<4x16x8xbf16, #tpu.memory_space<vmem>>, vector<1x16x8xbf16>
    %19 = vector.shape_cast %18 : vector<1x16x8xbf16> to vector<16x8xbf16>
    %cst_20 = arith.constant dense<0.000000e+00> : vector<64x8xf32>
    %20 = tpu.matmul %17, %19, %cst_20 {dimension_numbers = #tpu.dot_dimension_numbers<[1], [0], [0], [1], [0, 0, 1, 1], [], []>} : vector<64x16xbf16>, vector<16x8xbf16>, vector<64x8xf32> -> vector<64x8xf32>
    %21 = arith.addf %14, %20 : vector<64x8xf32>
    %c0_21 = arith.constant 0 : index
    %c1_22 = arith.constant 1 : index
    %c1_23 = arith.constant 1 : index
    %c0_24 = arith.constant 0 : index
    %22 = vector.load %arg1[%c0_21, %c1_22, %c1_23, %c0_24] : memref<1x9x9x16xbf16, #tpu.memory_space<vmem>>, vector<1x8x8x16xbf16>
    %23 = vector.shape_cast %22 : vector<1x8x8x16xbf16> to vector<8x8x16xbf16>
    %24 = vector.shape_cast %23 : vector<8x8x16xbf16> to vector<64x16xbf16>
    %c3 = arith.constant 3 : index
    %c0_25 = arith.constant 0 : index
    %c0_26 = arith.constant 0 : index
    %25 = vector.load %arg2[%c3, %c0_25, %c0_26] : memref<4x16x8xbf16, #tpu.memory_space<vmem>>, vector<1x16x8xbf16>
    %26 = vector.shape_cast %25 : vector<1x16x8xbf16> to vector<16x8xbf16>
    %cst_27 = arith.constant dense<0.000000e+00> : vector<64x8xf32>
    %27 = tpu.matmul %24, %26, %cst_27 {dimension_numbers = #tpu.dot_dimension_numbers<[1], [0], [0], [1], [0, 0, 1, 1], [], []>} : vector<64x16xbf16>, vector<16x8xbf16>, vector<64x8xf32> -> vector<64x8xf32>
    %28 = arith.addf %21, %27 : vector<64x8xf32>
    %29 = vector.shape_cast %28 : vector<64x8xf32> to vector<8x8x8xf32>
    %c0_28 = arith.constant 0 : index
    %c0_29 = arith.constant 0 : index
    %c0_30 = arith.constant 0 : index
    %c0_31 = arith.constant 0 : index
    %30 = vector.load %arg3[%c0_28, %c0_29, %c0_30, %c0_31] : memref<1x8x8x8xf32, #tpu.memory_space<vmem>>, vector<1x8x8x8xf32>
    %31 = vector.shape_cast %30 : vector<1x8x8x8xf32> to vector<8x8x8xf32>
    %32 = vector.shape_cast %29 : vector<8x8x8xf32> to vector<1x8x8x8xf32>
    tpu.vector_store %arg3[%c0_28, %c0_29, %c0_30, %c0_31], %32 {strides = array<i32>} : memref<1x8x8x8xf32, #tpu.memory_space<vmem>>, vector<1x8x8x8xf32>,
    return
  }
  func.func @transform_0(%arg0: i32) -> (i32, i32, i32, i32) {
    %c0_i32 = arith.constant 0 : i32
    %c0_i32_0 = arith.constant 0 : i32
    %c0_i32_1 = arith.constant 0 : i32
    %c0_i32_2 = arith.constant 0 : i32
    return %arg0, %c0_i32, %c0_i32_0, %c0_i32_1 : i32, i32, i32, i32
  }
  func.func @transform_1(%arg0: i32) -> (i32, i32, i32) {
    %c0_i32 = arith.constant 0 : i32
    %c0_i32_0 = arith.constant 0 : i32
    %c0_i32_1 = arith.constant 0 : i32
    %c0_i32_2 = arith.constant 0 : i32
    return %c0_i32, %c0_i32_0, %c0_i32_1 : i32, i32, i32
  }
  func.func @transform_2(%arg0: i32) -> (i32, i32, i32, i32) {
    %c0_i32 = arith.constant 0 : i32
    %c0_i32_0 = arith.constant 0 : i32
    %c0_i32_1 = arith.constant 0 : i32
    %c0_i32_2 = arith.constant 0 : i32
    return %arg0, %c0_i32, %c0_i32_0, %c0_i32_1 : i32, i32, i32, i32
  }
}

</mosaic_0001>

<bundles_post_ra>
// kernel: conv3x3_s2_p1_pallas.1
= control target key start
LH: loop header
LB: loop body
LE: loop exit
PB: predicated region body
PF: predicated region fallthrough
CT: control target
= control target key end

     0   :  { %s1106_s9 = smov 0   ;;  %s1283_s0 = inlined_call_operand.vmem [shape: bf16[2,9,9,16], index: 0, kind: input, shape index: {}]   ;;  %s1284_s1 = inlined_call_operand.vmem [shape: bf16[4,16,8], index: 1, kind: input, shape index: {}]   ;;  %s1285_s2 = inlined_call_operand.vmem [shape: f32[2,8,8,8], index: 2, kind: output, shape index: {}]  }
   0x1 LB: > { %s901_s10 = sadd.s32 4294967295, %s1089_s9   ;;  %p905_p0 = scmp.ge.s32.totalorder %s1089_s9, 1  ;;  %s1089_s9 = sphi %s1106_s9, %s12_s9  }
   0x2   : > { %p112_p1 = scmp.lt.s32.totalorder %s1089_s9, 3 }
   0x4   : > { %p113_p2 = pnand %p905_p0, %p112_p1 }
   0x5   : > { %v1071_v0 = vld [vmem:[%s1284_s1 + $0x10] sm:$0xff] (!%p113_p2)   ;;  %p134_p3 = scmp.lt.s32.totalorder (!%p113_p2), %s901_s10, 1  ;;  %v1074_v1 = vld [vmem:[%s1284_s1 + $0x8] sm:$0xff] (!%p113_p2)   ;;  %v1125_v2 = vld [vmem:[%s1284_s1] sm:$0xff] (!%p113_p2)   ;;  %vm299_vm0 = vcmask (!%p113_p2), 130048   ;;  %vm837_vm4 = vcmask (!%p113_p2), 64512  }
   0x6   : > { %116 = sbr.rel (%p113_p2) target bundleno = 290 (0x122), region = 28  ;;  %1018 = vmatprep.subr.bf16.mxu0 (!%p113_p2), %v1071_v0  ;;  %998 = vmatprep.subr.bf16.mxu1 (!%p113_p2), %v1074_v1  ;;  %v1078_v3 = vld [vmem:[%s1284_s1 + $0x18] sm:$0xff] (!%p113_p2)   ;;  %vm163_vm1 = vsmask.f32 (!%p113_p2), 3328  ;;  %vm164_vm2 = vsmask.f32 (!%p113_p2), 7440 }
   0x7   : > { %1019 = vmatpush3.bf16.msra.mxu0 (!%p113_p2), %v1071_v0  ;;  %999 = vmatpush3.bf16.msra.mxu1 (!%p113_p2), %v1074_v1  ;;  %vm1168_vm3 = vmor (!%p113_p2), %vm163_vm1, %vm164_vm2 }
   0x8   : > { %1008 = vmatprep.subr.bf16.mxu1 (!%p113_p2), %v1125_v2  ;;  %1028 = vmatprep.subr.bf16.mxu0 (!%p113_p2), %v1078_v3 }
   0xd   : > { %s1289_s10 = smov (!%p134_p3, %s901_s10), 1 }
   0xe   : > { %s1062_s17 = smul.u32 72, %s1289_s10  ;;  %s977_s23 = sshll.u32 %s1289_s10, 6 }
   0xf   : > { %s143_s26 = scalar_lea.vmem %s1285_s2, %s977_s23 }
  0x10   : > { %s1135_s22 = scalar_lea.vmem %s1283_s0, %s1062_s17 }
  0x11   : > { %v1072_v4 = vld [vmem:[%s1135_s22 + $0x8] ss:$8 sps:$4 sm:$0xff]   ;;  %v1073_v5 = vld [vmem:[%s1135_s22 + $0x18] ss:$8 sps:$4 sm:$0xff]   ;;  %v155_v9 = vld [vmem:[%s1135_s22 + $0x4] sm:$0x1] }
  0x12   : > { %1020 = vmatprep.mubr.msk.bf16.mxu0 %vm299_vm0, %v1072_v4  ;;  %v1075_v6 = vld [vmem:[%s1135_s22 + $0x28] ss:$8 sps:$4 sm:$0xff]   ;;  %v1143_v7 = vld [vmem:[%s1135_s22] sm:$0xf]  ;;  %v156_v10 = vld [vmem:[%s1135_s22 + $0xc] sm:$0x1] }
  0x13   : > { %1021 = vmatmul.mubr.msk.bf16.vlgmr.msra.gmra.mrb[0].mxu0 %vm299_vm0, %v1073_v5  ;;  %v1146_v8 = vld [vmem:[%s1135_s22 + $0x8] sm:$0xf]  ;;  %v167_v11 = vshrl.u32 %v1143_v7, 16  ;;  %v170_v12 = vshll.u32 %v1143_v7, 16  ;;  %v176_v13 = vshll.u32 %v155_v9, 16  ;;  %v190_v16 = vshll.u32 %v156_v10, 16 }
  0x14   : > { %1024 = vmatprep.mubr.msk.bf16.mxu0 %vm299_vm0, %v1075_v6  ;;  %v181_v14 = vshrl.u32 %v1146_v8, 16  ;;  %1029 = vmatpush3.bf16.msra.mxu0 %v1078_v3  ;;  %v184_v15 = vshll.u32 %v1146_v8, 16  ;;  %v1077_v21 = vld [vmem:[%s1135_s22 + $0x38] ss:$8 sps:$4 sm:$0xff]   ;;  %v1157_v24 = vld [vmem:[%s1135_s22 + $0x10] sm:$0xf] }
  0x15   : > { %v169_v17 = vrot.slane %v167_v11, 4  ;;  %v172_v18 = vrot.slane %v170_v12, 5  ;;  %v178_v19 = vrot.slane %v176_v13, 5  ;;  %v192_v23 = vrot.slane %v190_v16, 5  ;;  %v1160_v25 = vld [vmem:[%s1135_s22 + $0x18] sm:$0xf] }
  0x16   : > { %v183_v20 = vrot.slane %v181_v14, 4  ;;  %v186_v22 = vrot.slane %v184_v15, 5  ;;  %v157_v27 = vld [vmem:[%s1135_s22 + $0x14] sm:$0x1]  ;;  %v158_v28 = vld [vmem:[%s1135_s22 + $0x1c] sm:$0x1] }
  0x17   : > { %v173_v26 = vor.u32 %v172_v18, %v169_v17  ;;  %v195_v29 = vshrl.u32 %v1157_v24, 16  ;;  %v198_v30 = vshll.u32 %v1157_v24, 16  ;;  %v204_v33 = vshll.u32 %v157_v27, 16  ;;  %v948_v36 = vld [vmem:[%s1135_s22 + $0x8] sm:$0xf] }
  0x18   : > { %v187_v32 = vor.u32 %v186_v22, %v183_v20  ;;  %v209_v34 = vshrl.u32 %v1160_v25, 16  ;;  %v212_v35 = vshll.u32 %v1160_v25, 16  ;;  %v218_v40 = vshll.u32 %v158_v28, 16  ;;  %v949_v41 = vld [vmem:[%s1135_s22 + $0xc] sm:$0x1] }
  0x19   : > { %v174_v37 = vrot.slane %v173_v26, 4  ;;  %v197_v38 = vrot.slane %v195_v29, 4  ;;  %v200_v39 = vrot.slane %v198_v30, 5  ;;  %v206_v43 = vrot.slane %v204_v33, 5  ;;  %v950_v46 = vld [vmem:[%s1135_s22 + $0x10] sm:$0xf] }
  0x1a   : > { %v188_v42 = vrot.slane %v187_v32, 4  ;;  %v211_v44 = vrot.slane %v209_v34, 4  ;;  %v214_v45 = vrot.slane %v212_v35, 5  ;;  %v220_v49 = vrot.slane %v218_v40, 5  ;;  %v951_v53 = vld [vmem:[%s1135_s22 + $0x14] sm:$0x1] }
  0x1b   : > { %1025 = vmatmul.mubr.msk.bf16.gmra.mrb[4].mxu0 %vm299_vm0, %v1077_v21  ;;  %v179_v47 = vsel %vm1168_vm3, %v174_v37, %v178_v19  ;;  %v201_v48 = vor.u32 %v200_v39, %v197_v38  ;;  %v620_v50 = vshrl.u32 %v948_v36, 16  ;;  %v623_v54 = vshll.u32 %v948_v36, 16  ;;  %v1184_v56 = vld [vmem:[%s1135_s22 + $0x20] sm:$0xf]  ;;  %v159_v1 = vld [vmem:[%s1135_s22 + $0x24] sm:$0x1] }
  0x1c   : > { %v193_v51 = vsel %vm1168_vm3, %v188_v42, %v192_v23  ;;  %v215_v52 = vor.u32 %v214_v45, %v211_v44  ;;  %v629_v55 = vshll.u32 %v949_v41, 16  ;;  %v634_v60 = vshrl.u32 %v950_v46, 16  ;;  %v1191_v6 = vld [vmem:[%s1135_s22 + $0x28] sm:$0xf]  ;;  %v160_v13 = vld [vmem:[%s1135_s22 + $0x2c] sm:$0x1] }
  0x1d   : > { %v911_v57 = vcombine.low %v179_v47, %v193_v51  ;;  %v202_v58 = vrot.slane %v201_v48, 4  ;;  %v622_v59 = vrot.slane %v620_v50, 4  ;;  %v625_v62 = vrot.slane %v623_v54, 5  ;;  %v952_v15 = vld [vmem:[%s1135_s22 + $0x18] sm:$0xf] }
  0x1e   : > { %v216_v61 = vrot.slane %v215_v52, 4  ;;  %v631_v63 = vrot.slane %v629_v55, 5  ;;  %v637_v0 = vshll.u32 %v950_v46, 16  ;;  %v636_v4 = vrot.slane %v634_v60, 4  ;;  %v953_v26 = vld [vmem:[%s1135_s22 + $0x1c] sm:$0x1] }
  0x1f   : > { %1000 = vmatprep.mubr.msk.bf16.mxu1 %vm299_vm0, %v911_v57  ;;  %v207_v3 = vsel %vm1168_vm3, %v202_v58, %v206_v43  ;;  %v643_v5 = vshll.u32 %v951_v53, 16  ;;  %v223_v9 = vshrl.u32 %v1184_v56, 16  ;;  %v626_v11 = vor.u32 %v625_v62, %v622_v59  ;;  %v954_v30 = vld [vmem:[%s1135_s22 + $0x20] sm:$0xf]  ;;  %v955_v39 = vld [vmem:[%s1135_s22 + $0x24] sm:$0x1] }
  0x20   : > { %v221_v10 = vsel %vm1168_vm3, %v216_v61, %v220_v49  ;;  %v639_v12 = vrot.slane %v637_v0, 5  ;;  %v226_v14 = vshll.u32 %v1184_v56, 16  ;;  %v232_v19 = vshll.u32 %v159_v1, 16  ;;  %v1214_v50 = vld [vmem:[%s1135_s22 + $0x38] sm:$0xf] }
  0x21   : > { %v912_v16 = vcombine.low %v207_v3, %v221_v10  ;;  %v645_v17 = vrot.slane %v643_v5, 5  ;;  %v225_v18 = vrot.slane %v223_v9, 4  ;;  %v627_v20 = vrot.slane %v626_v11, 4  ;;  %v161_v51 = vld [vmem:[%s1135_s22 + $0x34] sm:$0x1] }
  0x22   : > { %v640_v21 = vor.u32 %v639_v12, %v636_v4  ;;  %v228_v22 = vrot.slane %v226_v14, 5  ;;  %v237_v23 = vshrl.u32 %v1191_v6, 16  ;;  %v234_v27 = vrot.slane %v232_v19, 5  ;;  %v162_v62 = vld [vmem:[%s1135_s22 + $0x3c] sm:$0x1] }
  0x23   : > { %1001 = vmatmul.mubr.msk.bf16.vlgmr.msra.gmra.mrb[0].mxu1 %vm299_vm0, %v912_v16  ;;  %v240_v28 = vshll.u32 %v1191_v6, 16  ;;  %v246_v29 = vshll.u32 %v160_v13, 16  ;;  %v648_v32 = vshrl.u32 %v952_v15, 16  ;;  %v632_v33 = vsel %vm1168_vm3, %v627_v20, %v631_v63  ;;  %v956_v10 = vld [vmem:[%s1135_s22 + $0x28] sm:$0xf] }
  0x24   : > { %1009 = vmatpush3.bf16.msra.mxu1 %v1125_v2  ;;  %v641_v34 = vrot.slane %v640_v21, 4  ;;  %v229_v35 = vor.u32 %v228_v22, %v225_v18  ;;  %v239_v36 = vrot.slane %v237_v23, 4  ;;  %v651_v41 = vshll.u32 %v952_v15, 16  ;;  %v1211_v2 = vld [vmem:[%s1135_s22 + $0x30] sm:$0xf] }
  0x25   : > { %v242_v37 = vrot.slane %v240_v28, 5  ;;  %v248_v38 = vrot.slane %v246_v29, 5  ;;  %v650_v40 = vrot.slane %v648_v32, 4  ;;  %v657_v44 = vshll.u32 %v953_v26, 16  ;;  %v957_v11 = vld [vmem:[%s1135_s22 + $0x2c] sm:$0x1] }
  0x26   : > { %v646_v42 = vsel %vm1168_vm3, %v641_v34, %v645_v17  ;;  %v230_v43 = vrot.slane %v229_v35, 4  ;;  %v662_v45 = vshrl.u32 %v954_v30, 16  ;;  %v653_v48 = vrot.slane %v651_v41, 5  ;;  %v958_v15 = vld [vmem:[%s1135_s22 + $0x30] sm:$0xf] }
  0x27   : > { %v966_v46 = vcombine.low %v632_v33, %v646_v42  ;;  %v243_v47 = vor.u32 %v242_v37, %v239_v36  ;;  %v665_v49 = vshll.u32 %v954_v30, 16  ;;  %v659_v53 = vrot.slane %v657_v44, 5  ;;  %v959_v22 = vld [vmem:[%s1135_s22 + $0x34] sm:$0x1]  ;;  %v960_v30 = vld [vmem:[%s1135_s22 + $0x38] sm:$0xf] }
  0x28   : > { %v235_v52 = vsel %vm1168_vm3, %v230_v43, %v234_v27  ;;  %v664_v54 = vrot.slane %v662_v45, 4  ;;  %v671_v55 = vshll.u32 %v955_v39, 16  ;;  %v654_v58 = vor.u32 %v653_v48, %v650_v40  ;;  %v961_v36 = vld [vmem:[%s1135_s22 + $0x3c] sm:$0x1]  ;;  %v962_v41 = vld [vmem:[%s1135_s22 + $0x40] sm:$0xf] }
  0x29   : > { %1030 = vmatprep.mubr.msk.bf16.mxu0 %vm299_vm0, %v966_v46  ;;  %v244_v57 = vrot.slane %v243_v47, 4  ;;  %v667_v59 = vrot.slane %v665_v49, 5  ;;  %v251_v60 = vshrl.u32 %v1211_v2, 16  ;;  %v254_v63 = vshll.u32 %v1211_v2, 16 }
  0x2a   : > { %v673_v61 = vrot.slane %v671_v55, 5  ;;  %v260_v0 = vshll.u32 %v161_v51, 16  ;;  %v265_v1 = vshrl.u32 %v1214_v50, 16  ;;  %v655_v4 = vrot.slane %v654_v58, 4 }
  0x2b   : > { %v249_v3 = vsel %vm1168_vm3, %v244_v57, %v248_v38  ;;  %v668_v5 = vor.u32 %v667_v59, %v664_v54  ;;  %v253_v9 = vrot.slane %v251_v60, 4  ;;  %v256_v13 = vrot.slane %v254_v63, 5 }
  0x2c   : > { %v913_v12 = vcombine.low %v235_v52, %v249_v3  ;;  %v267_v14 = vrot.slane %v265_v1, 4  ;;  %v920_v16 = vcombine.low %v1143_v7, %v1146_v8  ;;  %v660_v17 = vsel %vm1168_vm3, %v655_v4, %v659_v53  ;;  %v963_v52 = vld [vmem:[%s1135_s22 + $0x44] sm:$0x1] }
  0x2d   : > { %v669_v18 = vrot.slane %v668_v5, 4  ;;  %v268_v19 = vshll.u32 %v1214_v50, 16  ;;  %v274_v20 = vshll.u32 %v162_v62, 16  ;;  %v257_v21 = vor.u32 %v256_v13, %v253_v9 }
  0x2e   : > { %1004 = vmatprep.mubr.msk.bf16.mxu1 %vm299_vm0, %v913_v12  ;;  %v676_v23 = vshrl.u32 %v956_v10, 16  ;;  %v679_v26 = vshll.u32 %v956_v10, 16  ;;  %v685_v27 = vshll.u32 %v957_v11, 16  ;;  %v262_v7 = vrot.slane %v260_v0, 5 }
  0x2f   : > { %v674_v28 = vsel %vm1168_vm3, %v669_v18, %v673_v61  ;;  %v270_v8 = vrot.slane %v268_v19, 5  ;;  %v690_v29 = vshrl.u32 %v958_v15, 16  ;;  %v258_v33 = vrot.slane %v257_v21, 4 }
  0x30   : > { %v967_v32 = vcombine.low %v660_v17, %v674_v28  ;;  %v678_v34 = vrot.slane %v676_v23, 4  ;;  %v681_v35 = vrot.slane %v679_v26, 5  ;;  %v276_v38 = vrot.slane %v274_v20, 5 }
  0x31   : > { %v271_v37 = vor.u32 %v270_v8, %v267_v14  ;;  %v692_v39 = vrot.slane %v690_v29, 4  ;;  %v693_v40 = vshll.u32 %v958_v15, 16  ;;  %v687_v43 = vrot.slane %v685_v27, 5 }
  0x32   : > { %1031 = vmatmul.mubr.msk.bf16.vlgmr.msra.gmra.mrb[0].mxu0 %vm299_vm0, %v967_v32  ;;  %v682_v42 = vor.u32 %v681_v35, %v678_v34  ;;  %v699_v44 = vshll.u32 %v959_v22, 16  ;;  %v704_v45 = vshrl.u32 %v960_v30, 16  ;;  %v263_v46 = vsel %vm1168_vm3, %v258_v33, %v262_v7 }
  0x33   : > { %v272_v47 = vrot.slane %v271_v37, 4  ;;  %v695_v48 = vrot.slane %v693_v40, 5  ;;  %v707_v49 = vshll.u32 %v960_v30, 16  ;;  %v713_v54 = vshll.u32 %v961_v36, 16 }
  0x34   : > { %v683_v51 = vrot.slane %v682_v42, 4  ;;  %v706_v53 = vrot.slane %v704_v45, 4  ;;  %v718_v55 = vshrl.u32 %v962_v41, 16  ;;  %v701_v59 = vrot.slane %v699_v44, 5 }
  0x35   : > { %v277_v57 = vsel %vm1168_vm3, %v272_v47, %v276_v38  ;;  %v696_v58 = vor.u32 %v695_v48, %v692_v39  ;;  %v709_v60 = vrot.slane %v707_v49, 5  ;;  %v721_v63 = vshll.u32 %v962_v41, 16 }
  0x36   : > { %v914_v61 = vcombine.low %v263_v46, %v277_v57  ;;  %v720_v62 = vrot.slane %v718_v55, 4  ;;  %v688_v0 = vsel %vm1168_vm3, %v683_v51, %v687_v43  ;;  %v727_v4 = vshll.u32 %v963_v52, 16 }
  0x37   : > { %v697_v1 = vrot.slane %v696_v58, 4  ;;  %v710_v3 = vor.u32 %v709_v60, %v706_v53  ;;  %v715_v5 = vrot.slane %v713_v54, 5  ;;  %v723_v9 = vrot.slane %v721_v63, 5 }
  0x38   : > { %1005 = vmatmul.mubr.msk.bf16.gmra.mrb[4].mxu1 %vm299_vm0, %v914_v61  ;;  %v729_v14 = vrot.slane %v727_v4, 5  ;;  %v921_v18 = vcombine.low %v1157_v24, %v1160_v25  ;;  %v922_v19 = vcombine.low %v1184_v56, %v1191_v6  ;;  %v923_v21 = vcombine.low %v1211_v2, %v1214_v50 }
  0x39   : > { %v702_v10 = vsel %vm1168_vm3, %v697_v1, %v701_v59  ;;  %1010 = vmatprep.mubr.msk.bf16.mxu1 %vm299_vm0, %v920_v16  ;;  %v711_v11 = vrot.slane %v710_v3, 4  ;;  %v724_v13 = vor.u32 %v723_v9, %v720_v62 }
  0x3a   : > { %v968_v12 = vcombine.low %v688_v0, %v702_v10 }
  0x3b   : > { %v716_v15 = vsel %vm1168_vm3, %v711_v11, %v715_v5  ;;  %v725_v17 = vrot.slane %v724_v13, 4 }
  0x3c   : > { %1034 = vmatprep.mubr.msk.bf16.mxu0 %vm299_vm0, %v968_v12 }
  0x3d   : > { %v730_v16 = vsel %vm1168_vm3, %v725_v17, %v729_v14 }
  0x3e   : > { %v969_v20 = vcombine.low %v716_v15, %v730_v16 }
  0x40   : > { %1011 = vmatmul.mubr.msk.bf16.vlgmr.msra.gmra.mrb[0].mxu1 %vm299_vm0, %v921_v18  ;;  %1035 = vmatmul.mubr.msk.bf16.gmra.mrb[4].mxu0 %vm299_vm0, %v969_v20 }
  0x41   : > { %1014 = vmatprep.mubr.msk.bf16.mxu1 %vm299_vm0, %v922_v19 }
  0x48   : > { %1015 = vmatmul.mubr.msk.bf16.gmra.mrb[4].mxu1 %vm299_vm0, %v923_v21 }
 0x105   : > { %v1032_v22 = vpop.f32.mrb[0].mxu0 }
 0x106   : > { %v798_v24 = vpop.f32.mrb[1].mxu0 }
 0x107   : > { %v1033_v25 = vpop.f32.mrb[2].mxu0 }
 0x108   : > { %v801_v23 = vpop.f32.mrb[3].mxu0 }
 0x113   : > { %v1012_v31 = vpop.f32.mrb[0].mxu1  ;;  %v1036_v56 = vpop.f32.mrb[4].mxu0 }
 0x114   : > { %v1038_v6 = vadd.f32 %v1032_v22, %v1012_v31  ;;  %v449_v26 = vpop.f32.mrb[1].mxu1  ;;  %v814_v27 = vpop.f32.mrb[5].mxu0 }
 0x115   : > { %v1039_v28 = vadd.f32 %v798_v24, %v449_v26  ;;  %v1013_v7 = vpop.f32.mrb[2].mxu1  ;;  %v1037_v2 = vpop.f32.mrb[6].mxu0 }
 0x116   : > { %840 = vst.msk [vmem:[%s143_s26 + $0x10] sm:$0xff] %vm837_vm4, %v1038_v6  ;;  %v1040_v50 = vadd.f32 %v1033_v25, %v1013_v7  ;;  %v452_v8 = vpop.f32.mrb[3].mxu1  ;;  %v817_v29 = vpop.f32.mrb[7].mxu0 }
 0x117   : > { %838 = vst.msk [vmem:[%s143_s26] sm:$0xff] %vm837_vm4, %v1039_v28  ;;  %v1041_v30 = vadd.f32 %v801_v23, %v452_v8 }
 0x118   : > { %841 = vst.msk [vmem:[%s143_s26 + $0x18] sm:$0xff] %vm837_vm4, %v1040_v50 }
 0x119   : > { %839 = vst.msk [vmem:[%s143_s26 + $0x8] sm:$0xff] %vm837_vm4, %v1041_v30 }
 0x11b   : > { %v1016_v32 = vpop.f32.mrb[4].mxu1 }
 0x11c   : > { %v1042_v33 = vadd.f32 %v1036_v56, %v1016_v32  ;;  %v465_v34 = vpop.f32.mrb[5].mxu1 }
 0x11d   : > { %v1043_v35 = vadd.f32 %v814_v27, %v465_v34  ;;  %v1017_v36 = vpop.f32.mrb[6].mxu1 }
 0x11e   : > { %844 = vst.msk [vmem:[%s143_s26 + $0x30] sm:$0xff] %vm837_vm4, %v1042_v33  ;;  %v1044_v37 = vadd.f32 %v1037_v2, %v1017_v36  ;;  %v468_v38 = vpop.f32.mrb[7].mxu1 }
 0x11f   : > { %842 = vst.msk [vmem:[%s143_s26 + $0x20] sm:$0xff] %vm837_vm4, %v1043_v35  ;;  %v1045_v39 = vadd.f32 %v817_v29, %v468_v38 }
 0x120   : > { %845 = vst.msk [vmem:[%s143_s26 + $0x38] sm:$0xff] %vm837_vm4, %v1044_v37 }
 0x121   : > { %843 = vst.msk [vmem:[%s143_s26 + $0x28] sm:$0xff] %vm837_vm4, %v1045_v39 }
 0x122 PF: > { %s12_s9 = sadd.s32 1, %s1089_s9  }
 0x123   : > { %p9_p4 = scmp.ge.s32.totalorder %s12_s9, 4  }
 0x125   :  { %11 = sbr.rel (!%p9_p4) target bundleno = 1 (0x1), region = 62 }

</bundles_post_ra>
